<compile_context>
chip_gen: v7x
topology: tpu7x:2x2x1
jax: 0.10.0
libtpu: 0.0.40
codegen_flags: <defaults>
</compile_context>

<pallas_src>
import math
import functools

import jax
import jax.numpy as jnp
from jax import lax
from jax.experimental import pallas as pl
from jax.experimental.pallas import tpu as pltpu


def _self_attention_kernel(x_ref, mask_ref,
                           wq_ref, bq_ref,
                           wk_ref, bk_ref,
                           wv_ref, bv_ref,
                           o_ref, *, dim, seq, bblk, compute_dtype):
    D, S = dim, seq

    # (Bblk, S, D) -> (Bblk*S, D): merging leading dims is layout-free and lets
    # the three projections feed the MXU one tall tile per step.
    x2 = x_ref[...].reshape(bblk * S, D).astype(compute_dtype)

    wq = wq_ref[...].astype(compute_dtype)
    wk = wk_ref[...].astype(compute_dtype)
    wv = wv_ref[...].astype(compute_dtype)

    q = jnp.dot(x2, wq, preferred_element_type=jnp.float32) + bq_ref[...]
    k = jnp.dot(x2, wk, preferred_element_type=jnp.float32) + bk_ref[...]
    v = jnp.dot(x2, wv, preferred_element_type=jnp.float32) + bv_ref[...]

    q3 = q.reshape(bblk, S, D).astype(compute_dtype)
    k3 = k.reshape(bblk, S, D).astype(compute_dtype)
    v3 = v.reshape(bblk, S, D).astype(compute_dtype)

    # Q @ K^T: contract the last dim of both operands, batched over Bblk.
    scores = lax.dot_general(
        q3, k3,
        dimension_numbers=(((2,), (2,)), ((0,), (0,))),
        preferred_element_type=jnp.float32)                    # (Bblk, S, S) f32
    scores = scores * (1.0 / math.sqrt(D))

    # masked_fill(mask, -inf): large finite negative avoids NaN on fully-masked rows.
    mask = mask_ref[...]                                       # (Bblk, S, S) int8
    scores = jnp.where(mask != 0, jnp.float32(-1e30), scores)

    # Numerically-stable softmax, kept entirely in f32.
    m = jnp.max(scores, axis=-1, keepdims=True)
    e = jnp.exp(scores - m)
    denom = jnp.sum(e, axis=-1, keepdims=True)
    attn = e * pl.reciprocal(denom, approx=True)

    # TODO(synk): dropout on attention weights is identity in eval mode; training
    # dropout (pltpu.prng_seed + pltpu.stateful_bernoulli) is not implemented.

    out = lax.dot_general(
        attn.astype(compute_dtype), v3,
        dimension_numbers=(((2,), (1,)), ((0,), (0,))),
        preferred_element_type=jnp.float32)                    # (Bblk, S, D)

    # Lane-dense store: pack the Bblk per-batch outputs along the lane axis so the
    # stored block's last dim is Bblk*D (>=128 lanes -> unmasked vst).
    slab = jnp.concatenate([out[b] for b in range(bblk)], axis=-1)   # (S, Bblk*D)
    o_ref[...] = slab.astype(o_ref.dtype)

    # TODO(synk): for production S (>~1K) this should be restructured flash-style
    # (KV-tile grid axis marked "arbitrary", running max/sum/acc in VMEM scratch)
    # so the O(S^2) scores tile never materializes — mandatory under v7x's 64 MiB.


def self_attention(x, mask=None, *, wq, bq, wk, bk, wv, bv,
                   bblk=None, compute_dtype=jnp.bfloat16):
    """x: (B,S,D) f32; mask: (B,S,S) bool/int/float, nonzero => masked (or None)."""
    B, S, D = x.shape

    if mask is None:
        mask = jnp.zeros((B, S, S), dtype=jnp.int8)

    if bblk is None:
        # Enough batch elements per step for a >=128-lane output slab.
        bblk = min(B, max(1, pl.cdiv(128, D)))
    nb = pl.cdiv(B, bblk)
    Bp = nb * bblk
    if Bp != B:  # pad batch to a multiple of the block; padded rows are discarded.
        x = jnp.pad(x, ((0, Bp - B), (0, 0), (0, 0)))
        mask = jnp.pad(mask, ((0, Bp - B), (0, 0), (0, 0)))

    mask_i8 = (mask != 0).astype(jnp.int8)

    kernel = functools.partial(_self_attention_kernel, dim=D, seq=S,
                               bblk=bblk, compute_dtype=compute_dtype)

    def full(shape):
        return pl.BlockSpec(shape, lambda g, _s=shape: (0,) * len(_s))

    flops = 2 * Bp * S * D * (3 * D + 2 * S)
    bytes_accessed = (Bp * S * D * 4 + Bp * S * S * 1
                      + 3 * (D * D + D) * 4 + Bp * S * D * 4)
    cost = pl.CostEstimate(flops=flops,
                           transcendentals=Bp * S * S + Bp * S,
                           bytes_accessed=bytes_accessed)

    out = pl.pallas_call(
        kernel,
        out_shape=jax.ShapeDtypeStruct((nb, S, bblk * D), jnp.float32),
        grid_spec=pltpu.PrefetchScalarGridSpec(
            num_scalar_prefetch=0,
            grid=(nb,),
            in_specs=[
                pl.BlockSpec((bblk, S, D), lambda g: (g, 0, 0)),   # x
                pl.BlockSpec((bblk, S, S), lambda g: (g, 0, 0)),   # mask (int8)
                full((D, D)), full((1, D)),                        # wq, bq
                full((D, D)), full((1, D)),                        # wk, bk
                full((D, D)), full((1, D)),                        # wv, bv
            ],
            out_specs=pl.BlockSpec((None, S, bblk * D), lambda g: (g, 0, 0)),
        ),
        compiler_params=pltpu.CompilerParams(
            dimension_semantics=("parallel",)),
        cost_estimate=cost,
    )(x, mask_i8, wq, bq, wk, bk, wv, bv)

    # Un-pack the lane-dense slab: (nb, S, Bblk*D) -> (B, S, D).
    out = out.reshape(nb, S, bblk, D).swapaxes(1, 2).reshape(Bp, S, D)
    return out[:B]


def _reference(x, mask, wq, bq, wk, bk, wv, bv):
    D = x.shape[-1]
    q = x @ wq + bq
    k = x @ wk + bk
    v = x @ wv + bv
    scores = jnp.einsum("bqd,bkd->bqk", q, k) / math.sqrt(D)
    scores = jnp.where(mask, -jnp.inf, scores)
    attn = jax.nn.softmax(scores, axis=-1)
    return jnp.einsum("bqk,bkd->bqd", attn, v)


if __name__ == "__main__":
    B, S, D = 8, 8, 32
    key = jax.random.PRNGKey(0)
    kx, kq, kk, kv, kbq, kbk, kbv = jax.random.split(key, 7)

    x = jax.random.normal(kx, (B, S, D), dtype=jnp.float32)

    # Deterministic parameter init (nn.Linear-style uniform bounds).
    bound = 1.0 / math.sqrt(D)
    wq = jax.random.uniform(kq, (D, D), jnp.float32, -bound, bound)
    wk = jax.random.uniform(kk, (D, D), jnp.float32, -bound, bound)
    wv = jax.random.uniform(kv, (D, D), jnp.float32, -bound, bound)
    bq = jax.random.uniform(kbq, (1, D), jnp.float32, -bound, bound)
    bk = jax.random.uniform(kbk, (1, D), jnp.float32, -bound, bound)
    bv = jax.random.uniform(kbv, (1, D), jnp.float32, -bound, bound)

    # Causal mask: True where the position is masked (strictly upper triangular).
    idx = jnp.arange(S)
    tri = idx[None, :] > idx[:, None]
    mask = jnp.broadcast_to(tri, (B, S, S))

    out = self_attention(x, mask, wq=wq, bq=bq, wk=wk, bk=bk, wv=wv, bv=bv)
    out = jax.block_until_ready(out)

    ref = _reference(x, mask, wq, bq, wk, bk, wv, bv)
    assert out.shape == (B, S, D)
    max_diff = float(jnp.max(jnp.abs(out - ref)))
    # bf16 matmul inputs with f32 accumulation -> loose but meaningful tolerance.
    assert jnp.allclose(out, ref, atol=5e-2, rtol=5e-2), (
        f"mismatch vs reference (max abs diff {max_diff})")

    print("KERNEL_OK")
</pallas_src>

<mosaic_0001>
module attributes {stable_mosaic.version = 11 : i64} {
  func.func @_self_attention_kernel(%arg0: i32, %arg1: memref<4x8x32xf32, #tpu.memory_space<vmem>>, %arg2: memref<4x8x8xi8, #tpu.memory_space<vmem>>, %arg3: memref<32x32xf32, #tpu.memory_space<vmem>>, %arg4: memref<1x32xf32, #tpu.memory_space<vmem>>, %arg5: memref<32x32xf32, #tpu.memory_space<vmem>>, %arg6: memref<1x32xf32, #tpu.memory_space<vmem>>, %arg7: memref<32x32xf32, #tpu.memory_space<vmem>>, %arg8: memref<1x32xf32, #tpu.memory_space<vmem>>, %arg9: memref<1x8x128xf32, #tpu.memory_space<vmem>>) attributes {dimension_semantics = [#tpu.dimension_semantics<parallel>], iteration_bounds = array<i64: 2>, scalar_prefetch = 0 : i64, scratch_operands = 0 : i64, tpu.core_type = #tpu.core_type<tc>, window_params = [{transform_indices = @transform_0, window_bounds = array<i64: 4, 8, 32>}, {transform_indices = @transform_1, window_bounds = array<i64: 4, 8, 8>}, {pipeline_mode = #tpu.pipeline_mode<synchronous>, transform_indices = @transform_2, window_bounds = array<i64: 32, 32>}, {pipeline_mode = #tpu.pipeline_mode<synchronous>, transform_indices = @transform_3, window_bounds = array<i64: 1, 32>}, {pipeline_mode = #tpu.pipeline_mode<synchronous>, transform_indices = @transform_4, window_bounds = array<i64: 32, 32>}, {pipeline_mode = #tpu.pipeline_mode<synchronous>, transform_indices = @transform_5, window_bounds = array<i64: 1, 32>}, {pipeline_mode = #tpu.pipeline_mode<synchronous>, transform_indices = @transform_6, window_bounds = array<i64: 32, 32>}, {pipeline_mode = #tpu.pipeline_mode<synchronous>, transform_indices = @transform_7, window_bounds = array<i64: 1, 32>}, {transform_indices = @transform_8, window_bounds = array<i64: 1, 8, 128>}]} {
    %c0 = arith.constant 0 : index
    %c0_0 = arith.constant 0 : index
    %c0_1 = arith.constant 0 : index
    %0 = vector.load %arg1[%c0, %c0_0, %c0_1] : memref<4x8x32xf32, #tpu.memory_space<vmem>>, vector<4x8x32xf32>
    %1 = vector.shape_cast %0 : vector<4x8x32xf32> to vector<32x32xf32>
    %2 = arith.truncf %1 : vector<32x32xf32> to vector<32x32xbf16>
    %c0_2 = arith.constant 0 : index
    %c0_3 = arith.constant 0 : index
    %3 = vector.load %arg3[%c0_2, %c0_3] : memref<32x32xf32, #tpu.memory_space<vmem>>, vector<32x32xf32>
    %4 = arith.truncf %3 : vector<32x32xf32> to vector<32x32xbf16>
    %c0_4 = arith.constant 0 : index
    %c0_5 = arith.constant 0 : index
    %5 = vector.load %arg5[%c0_4, %c0_5] : memref<32x32xf32, #tpu.memory_space<vmem>>, vector<32x32xf32>
    %6 = arith.truncf %5 : vector<32x32xf32> to vector<32x32xbf16>
    %c0_6 = arith.constant 0 : index
    %c0_7 = arith.constant 0 : index
    %7 = vector.load %arg7[%c0_6, %c0_7] : memref<32x32xf32, #tpu.memory_space<vmem>>, vector<32x32xf32>
    %8 = arith.truncf %7 : vector<32x32xf32> to vector<32x32xbf16>
    %cst = arith.constant dense<0.000000e+00> : vector<32x32xf32>
    %9 = tpu.matmul %2, %4, %cst {dimension_numbers = #tpu.dot_dimension_numbers<[1], [0], [0], [1], [0, 0, 1, 1], [], []>} : vector<32x32xbf16>, vector<32x32xbf16>, vector<32x32xf32> -> vector<32x32xf32>
    %c0_8 = arith.constant 0 : index
    %c0_9 = arith.constant 0 : index
    %10 = vector.load %arg4[%c0_8, %c0_9] : memref<1x32xf32, #tpu.memory_space<vmem>>, vector<1x32xf32>
    %11 = vector.broadcast %10 : vector<1x32xf32> to vector<32x32xf32>
    %12 = arith.addf %9, %11 : vector<32x32xf32>
    %cst_10 = arith.constant dense<0.000000e+00> : vector<32x32xf32>
    %13 = tpu.matmul %2, %6, %cst_10 {dimension_numbers = #tpu.dot_dimension_numbers<[1], [0], [0], [1], [0, 0, 1, 1], [], []>} : vector<32x32xbf16>, vector<32x32xbf16>, vector<32x32xf32> -> vector<32x32xf32>
    %c0_11 = arith.constant 0 : index
    %c0_12 = arith.constant 0 : index
    %14 = vector.load %arg6[%c0_11, %c0_12] : memref<1x32xf32, #tpu.memory_space<vmem>>, vector<1x32xf32>
    %15 = vector.broadcast %14 : vector<1x32xf32> to vector<32x32xf32>
    %16 = arith.addf %13, %15 : vector<32x32xf32>
    %cst_13 = arith.constant dense<0.000000e+00> : vector<32x32xf32>
    %17 = tpu.matmul %2, %8, %cst_13 {dimension_numbers = #tpu.dot_dimension_numbers<[1], [0], [0], [1], [0, 0, 1, 1], [], []>} : vector<32x32xbf16>, vector<32x32xbf16>, vector<32x32xf32> -> vector<32x32xf32>
    %c0_14 = arith.constant 0 : index
    %c0_15 = arith.constant 0 : index
    %18 = vector.load %arg8[%c0_14, %c0_15] : memref<1x32xf32, #tpu.memory_space<vmem>>, vector<1x32xf32>
    %19 = vector.broadcast %18 : vector<1x32xf32> to vector<32x32xf32>
    %20 = arith.addf %17, %19 : vector<32x32xf32>
    %21 = vector.shape_cast %12 : vector<32x32xf32> to vector<4x8x32xf32>
    %22 = arith.truncf %21 : vector<4x8x32xf32> to vector<4x8x32xbf16>
    %23 = vector.shape_cast %16 : vector<32x32xf32> to vector<4x8x32xf32>
    %24 = arith.truncf %23 : vector<4x8x32xf32> to vector<4x8x32xbf16>
    %25 = vector.shape_cast %20 : vector<32x32xf32> to vector<4x8x32xf32>
    %26 = arith.truncf %25 : vector<4x8x32xf32> to vector<4x8x32xbf16>
    %cst_16 = arith.constant dense<0.000000e+00> : vector<4x8x8xf32>
    %27 = tpu.matmul %22, %24, %cst_16 {dimension_numbers = #tpu.dot_dimension_numbers<[2], [2], [1], [1], [0, 0, 0, 1, 1, 1], [0], [0]>} : vector<4x8x32xbf16>, vector<4x8x32xbf16>, vector<4x8x8xf32> -> vector<4x8x8xf32>
    %cst_17 = arith.constant 0.176776692 : f32
    %28 = vector.broadcast %cst_17 : f32 to vector<4x8x8xf32>
    %29 = arith.mulf %27, %28 : vector<4x8x8xf32>
    %c0_18 = arith.constant 0 : index
    %c0_19 = arith.constant 0 : index
    %c0_20 = arith.constant 0 : index
    %30 = vector.load %arg2[%c0_18, %c0_19, %c0_20] : memref<4x8x8xi8, #tpu.memory_space<vmem>>, vector<4x8x8xi8>
    %c0_i8 = arith.constant 0 : i8
    %31 = vector.broadcast %c0_i8 : i8 to vector<4x8x8xi8>
    %32 = arith.cmpi ne, %30, %31 : vector<4x8x8xi8>
    %cst_21 = arith.constant -1.000000e+30 : f32
    %33 = vector.broadcast %cst_21 : f32 to vector<4x8x8xf32>
    %34 = arith.select %32, %33, %29 : vector<4x8x8xi1>, vector<4x8x8xf32>
    %cst_22 = arith.constant dense<0xFF800000> : vector<4x8xf32>
    %35 = vector.multi_reduction <maximumf>, %34, %cst_22 [2] : vector<4x8x8xf32> to vector<4x8xf32>
    %36 = vector.shape_cast %35 : vector<4x8xf32> to vector<4x8x1xf32>
    %37 = vector.broadcast %36 : vector<4x8x1xf32> to vector<4x8x8xf32>
    %38 = arith.subf %34, %37 : vector<4x8x8xf32>
    %39 = math.exp %38 : vector<4x8x8xf32>
    %cst_23 = arith.constant dense<0.000000e+00> : vector<4x8xf32>
    %40 = vector.multi_reduction <add>, %39, %cst_23 [2] : vector<4x8x8xf32> to vector<4x8xf32>
    %41 = vector.shape_cast %40 : vector<4x8xf32> to vector<4x8x1xf32>
    %42 = tpu.reciprocal %41 {approx = true} : vector<4x8x1xf32> -> vector<4x8x1xf32>
    %43 = vector.broadcast %42 : vector<4x8x1xf32> to vector<4x8x8xf32>
    %44 = arith.mulf %39, %43 : vector<4x8x8xf32>
    %45 = arith.truncf %44 : vector<4x8x8xf32> to vector<4x8x8xbf16>
    %cst_24 = arith.constant dense<0.000000e+00> : vector<4x8x32xf32>
    %46 = tpu.matmul %45, %26, %cst_24 {dimension_numbers = #tpu.dot_dimension_numbers<[2], [1], [1], [2], [0, 0, 0, 1, 1, 2], [0], [0]>} : vector<4x8x8xbf16>, vector<4x8x32xbf16>, vector<4x8x32xf32> -> vector<4x8x32xf32>
    %47 = vector.extract_strided_slice %46 {offsets = [0, 0, 0], sizes = [1, 8, 32], strides = [1, 1, 1]} : vector<4x8x32xf32> to vector<1x8x32xf32>
    %48 = vector.shape_cast %47 : vector<1x8x32xf32> to vector<8x32xf32>
    %49 = vector.extract_strided_slice %46 {offsets = [1, 0, 0], sizes = [1, 8, 32], strides = [1, 1, 1]} : vector<4x8x32xf32> to vector<1x8x32xf32>
    %50 = vector.shape_cast %49 : vector<1x8x32xf32> to vector<8x32xf32>
    %51 = vector.extract_strided_slice %46 {offsets = [2, 0, 0], sizes = [1, 8, 32], strides = [1, 1, 1]} : vector<4x8x32xf32> to vector<1x8x32xf32>
    %52 = vector.shape_cast %51 : vector<1x8x32xf32> to vector<8x32xf32>
    %53 = vector.extract_strided_slice %46 {offsets = [3, 0, 0], sizes = [1, 8, 32], strides = [1, 1, 1]} : vector<4x8x32xf32> to vector<1x8x32xf32>
    %54 = vector.shape_cast %53 : vector<1x8x32xf32> to vector<8x32xf32>
    %55 = tpu.concatenate %48, %50, %52, %54 in 1 : vector<8x32xf32>, vector<8x32xf32>, vector<8x32xf32>, vector<8x32xf32> -> vector<8x128xf32>
    %c0_25 = arith.constant 0 : index
    %c0_26 = arith.constant 0 : index
    %c0_27 = arith.constant 0 : index
    %56 = vector.load %arg9[%c0_25, %c0_26, %c0_27] : memref<1x8x128xf32, #tpu.memory_space<vmem>>, vector<1x8x128xf32>
    %57 = vector.shape_cast %56 : vector<1x8x128xf32> to vector<8x128xf32>
    %58 = vector.shape_cast %55 : vector<8x128xf32> to vector<1x8x128xf32>
    tpu.vector_store %arg9[%c0_25, %c0_26, %c0_27], %58 {strides = array<i32>} : memref<1x8x128xf32, #tpu.memory_space<vmem>>, vector<1x8x128xf32>,
    return
  }
  func.func @transform_0(%arg0: i32) -> (i32, i32, i32) {
    %c0_i32 = arith.constant 0 : i32
    %c0_i32_0 = arith.constant 0 : i32
    %c0_i32_1 = arith.constant 0 : i32
    return %arg0, %c0_i32, %c0_i32_0 : i32, i32, i32
  }
  func.func @transform_1(%arg0: i32) -> (i32, i32, i32) {
    %c0_i32 = arith.constant 0 : i32
    %c0_i32_0 = arith.constant 0 : i32
    %c0_i32_1 = arith.constant 0 : i32
    return %arg0, %c0_i32, %c0_i32_0 : i32, i32, i32
  }
  func.func @transform_2(%arg0: i32) -> (i32, i32) {
    %c0_i32 = arith.constant 0 : i32
    %c0_i32_0 = arith.constant 0 : i32
    %c0_i32_1 = arith.constant 0 : i32
    return %c0_i32, %c0_i32_0 : i32, i32
  }
  func.func @transform_3(%arg0: i32) -> (i32, i32) {
    %c0_i32 = arith.constant 0 : i32
    %c0_i32_0 = arith.constant 0 : i32
    %c0_i32_1 = arith.constant 0 : i32
    return %c0_i32, %c0_i32_0 : i32, i32
  }
  func.func @transform_4(%arg0: i32) -> (i32, i32) {
    %c0_i32 = arith.constant 0 : i32
    %c0_i32_0 = arith.constant 0 : i32
    %c0_i32_1 = arith.constant 0 : i32
    return %c0_i32, %c0_i32_0 : i32, i32
  }
  func.func @transform_5(%arg0: i32) -> (i32, i32) {
    %c0_i32 = arith.constant 0 : i32
    %c0_i32_0 = arith.constant 0 : i32
    %c0_i32_1 = arith.constant 0 : i32
    return %c0_i32, %c0_i32_0 : i32, i32
  }
  func.func @transform_6(%arg0: i32) -> (i32, i32) {
    %c0_i32 = arith.constant 0 : i32
    %c0_i32_0 = arith.constant 0 : i32
    %c0_i32_1 = arith.constant 0 : i32
    return %c0_i32, %c0_i32_0 : i32, i32
  }
  func.func @transform_7(%arg0: i32) -> (i32, i32) {
    %c0_i32 = arith.constant 0 : i32
    %c0_i32_0 = arith.constant 0 : i32
    %c0_i32_1 = arith.constant 0 : i32
    return %c0_i32, %c0_i32_0 : i32, i32
  }
  func.func @transform_8(%arg0: i32) -> (i32, i32, i32) {
    %c0_i32 = arith.constant 0 : i32
    %c0_i32_0 = arith.constant 0 : i32
    %c0_i32_1 = arith.constant 0 : i32
    return %arg0, %c0_i32, %c0_i32_0 : i32, i32, i32
  }
}

</mosaic_0001>

<bundles_post_ra>
// kernel: tpu_custom_call.1
= control target key start
LH: loop header
LB: loop body
LE: loop exit
PB: predicated region body
PF: predicated region fallthrough
CT: control target
= control target key end

     0   :  { %s2159_s0 = inlined_call_operand.hbm [shape: f32[8,8,32], index: 0, kind: input, shape index: {}]   ;;  %s2160_s1 = inlined_call_operand.hbm [shape: s8[8,8,8], index: 1, kind: input, shape index: {}]   ;;  %s2161_s2 = inlined_call_operand.hbm [shape: f32[32,32], index: 2, kind: input, shape index: {}]   ;;  %s2162_s3 = inlined_call_operand.vmem [shape: f32[1,32], index: 3, kind: input, shape index: {}]   ;;  %s2163_s4 = inlined_call_operand.hbm [shape: f32[32,32], index: 4, kind: input, shape index: {}]   ;;  %s2164_s5 = inlined_call_operand.vmem [shape: f32[1,32], index: 5, kind: input, shape index: {}]   ;;  %s2165_s6 = inlined_call_operand.hbm [shape: f32[32,32], index: 6, kind: input, shape index: {}]   ;;  %s2166_s7 = inlined_call_operand.vmem [shape: f32[1,32], index: 7, kind: input, shape index: {}]   ;;  %s2167_s8 = inlined_call_operand.hbm [shape: f32[2,8,128], index: 8, kind: output, shape index: {}]  }
   0x1   :  { %2174 = sst [smem:[#allocation19_spill]] %s2159_s0 }
   0x2   :  { %2175 = sst [smem:[#allocation20_spill]] %s2161_s2 }
   0x3   :  { %2176 = sst [smem:[#allocation21_spill]] %s2163_s4 }
   0x4   :  { %2177 = sst [smem:[#allocation22_spill]] %s2165_s6 }
   0x5   :  { %13 = vsyncpa [#allocation3], 0 }
   0x6   :  { %15 = vsyncpa [#allocation3 + $0x1], 0 }
   0x7   :  { %16 = vsyncpa [#allocation6], 0 }
   0x8   :  { %18 = vsyncpa [#allocation6 + $0x1], 0 }
   0x9   :  { %19 = vsyncpa [#allocation9], 0 }
   0xa   :  { %20 = vsyncpa [#allocation4], 0 }
   0xb   :  { %22 = vsyncpa [#allocation4 + $0x1], 0  ;;  %s1757_s27 = smov 0   ;;  %s1759_s28 = smov 0  }
   0xc   :  { %s1761_s29 = smov 0   ;;  %s1763_s30 = smov 0  }
   0xd LB: > { %2178 = sst [smem:[#allocation17_spill]] %s1682_s27  ;;  %s1778_s9 = sadd.s32 4294967295, %s1694_s30   ;;  %s1694_s30 = sphi %s1763_s30, %s2207_s30   ;;  %s1690_s29 = sphi %s1761_s29, %s2206_s29   ;;  %s1686_s28 = sphi %s1759_s28, %s2205_s28   ;;  %s1682_s27 = sphi %s1757_s27, %s2204_s27  }
   0xe   : > { %s1222_s10 = sadd.s32 4294967294, %s1694_s30   ;;  %p48_p0 = scmp.ne.s32.totalorder %s1686_s28, %s1682_s27 }
   0xf   : > { %p2168_p1 = scmp.eq.s32.totalorder %s1778_s9, 0  ;;  %p230_p3 = scmp.eq.s32.totalorder %s1222_s10, 1 }
  0x10   : > { %p1223_p5 = scmp.ge.s32.totalorder %s1694_s30, 1  ;;  %p237_p7 = scmp.lt.s32.totalorder %s1694_s30, 3 }
  0x11   : > { %p1787_p4 = por %p2168_p1, %p48_p0  ;;  %p1792_p6 = por %p230_p3, %p48_p0 }
  0x12   : > { %p1797_p8 = pnand %p1223_p5, %p237_p7  ;;  %s1696_s14 = smov [#allocation7]  }
  0x13   : > { %s2179_s11 = scalar_select %p1787_p4, 1, 0 }
  0x14   : > { %s2180_s12 = scalar_select %p1792_p6, 1, 0 }
  0x15   : > { %s2182_s13 = scalar_select %p1797_p8, 1, 0 }
  0x16   : > { %2181 = sst [smem:[#allocation18_spill]] %s2180_s12  ;;  %s249_s15 = sshll.u32 %s1696_s14, 4  ;;  %s1801_s15 = int_to_ptr.vmem [resolvable:$true] %s249_s15 }
  0x17   : > { %p1382_p9 = pneg %p1797_p8  ;;  %s1697_s17 = smov [#allocation8]  }
  0x18   : > { %s265_s18 = sshll.u32 %s1697_s17, 4  ;;  %s1698_s19 = smov [#allocation10]   ;;  %s1812_s18 = int_to_ptr.vmem [resolvable:$true] %s265_s18 }
  0x19   : > { %p1808_p11 = pnand %p1382_p9, %p2168_p1  ;;  %s1814_s20 = sshll.u32 %s1698_s19, 4  ;;  %s282_s20 = int_to_ptr.vmem [resolvable:$true] %s1814_s20 }
  0x1a   : > { %s2184_s2 = sld [smem:[#allocation20_spill]] }
  0x1b   : > { %p1824_p13 = pneg %p1808_p11 }
  0x20   : > { %s1472_s23 = scalar_lea.hbm %s2184_s2, 512 }
  0x21   : > { %p1473_p12 = scmp.ne.s32.totalorder %s2184_s2, %s1472_s23  ;;  %p1479_p5 = scmp.lt.u32.totalorder %s1472_s23, %s2184_s2 }
  0x23   : > { %p1475_p0 = pnand %p1824_p13, %p1473_p12 }
  0x25   : > { %p1476_p3 = pneg %p1475_p0 }
  0x27   : > { %p1481_p7 = pnand %p1479_p5, %p1476_p3 }
  0x29   : > { %1484 = shalt.err (!%p1481_p7)
}
  0x2a   : > { %s1485_s17 = scalar_lea.vmem %s1801_s15, 512  ;;  %p1493_p2 = scmp.lt.s32.totalorder %s1801_s15, %s1801_s15 }
  0x2b   : > { %p1486_p9 = scmp.ne.s32.totalorder %s1801_s15, %s1485_s17  ;;  %p1494_p6 = scmp.lt.s32.totalorder %s1485_s17, %s1485_s17 }
  0x2d   : > { %p1488_p10 = pnand %p1486_p9, %p1824_p13  ;;  %p1495_p12 = por %p1494_p6, %p1493_p2 }
  0x2f   : > { %p1489_p1 = pneg %p1488_p10 }
  0x31   : > { %p1496_p0 = pnand %p1495_p12, %p1489_p1 }
  0x33   : > { %1499 = shalt.err (!%p1496_p0)
}
  0x34   : > { %s2173_s19 = smov 128   ;;  %s1700_s21 = smov 8  }
  0x35   : > { %1385 = dma.hbm_to_vmem [thread:$0]  (!%p1808_p11), %s2184_s2, 512, %s1801_s15, [#allocation6], %s2173_s19, %s2173_s19, %s1700_s21  }
  0x36   : > { %s2186_s4 = sld [smem:[#allocation21_spill]] }
  0x3c   : > { %s1500_s10 = scalar_lea.hbm %s2186_s4, 512 }
  0x3d   : > { %p1501_p1 = scmp.ne.s32.totalorder %s2186_s4, %s1500_s10  ;;  %p1507_p10 = scmp.lt.u32.totalorder %s1500_s10, %s2186_s4 }
  0x3f   : > { %p1503_p2 = pnand %p1501_p1, %p1824_p13 }
  0x41   : > { %p1504_p6 = pneg %p1503_p2 }
  0x43   : > { %p1509_p3 = pnand %p1507_p10, %p1504_p6 }
  0x45   : > { %1512 = shalt.err (!%p1509_p3)
}
  0x46   : > { %s1513_s15 = scalar_lea.vmem %s1812_s18, 512  ;;  %p1521_p12 = scmp.lt.s32.totalorder %s1812_s18, %s1812_s18 }
  0x47   : > { %p1514_p5 = scmp.ne.s32.totalorder %s1812_s18, %s1513_s15  ;;  %p1522_p0 = scmp.lt.s32.totalorder %s1513_s15, %s1513_s15 }
  0x49   : > { %p1516_p7 = pnand %p1514_p5, %p1824_p13  ;;  %p1523_p1 = por %p1522_p0, %p1521_p12 }
  0x4b   : > { %p1517_p9 = pneg %p1516_p7 }
  0x4d   : > { %p1524_p2 = pnand %p1523_p1, %p1517_p9 }
  0x4f   : > { %1527 = shalt.err (!%p1524_p2)
}
  0x50   : > { %1388 = dma.hbm_to_vmem [thread:$0]  (!%p1808_p11), %s2186_s4, 512, %s1812_s18, [#allocation9], %s2173_s19, %s2173_s19, %s1700_s21  }
  0x51   : > { %s2187_s6 = sld [smem:[#allocation22_spill]] }
  0x57   : > { %s1528_s24 = scalar_lea.hbm %s2187_s6, 512 }
  0x58   : > { %p1529_p6 = scmp.ne.s32.totalorder %s2187_s6, %s1528_s24  ;;  %p1535_p5 = scmp.lt.u32.totalorder %s1528_s24, %s2187_s6 }
  0x5a   : > { %p1531_p10 = pnand %p1529_p6, %p1824_p13 }
  0x5c   : > { %p1532_p3 = pneg %p1531_p10 }
  0x5e   : > { %p1537_p7 = pnand %p1535_p5, %p1532_p3 }
  0x60   : > { %1540 = shalt.err (!%p1537_p7)
}
  0x61   : > { %s1541_s15 = scalar_lea.vmem %s282_s20, 512  ;;  %p1549_p1 = scmp.lt.s32.totalorder %s282_s20, %s282_s20 }
  0x62   : > { %p1542_p9 = scmp.ne.s32.totalorder %s282_s20, %s1541_s15  ;;  %p1550_p2 = scmp.lt.s32.totalorder %s1541_s15, %s1541_s15 }
  0x64   : > { %p1544_p12 = pnand %p1542_p9, %p1824_p13  ;;  %p1551_p4 = por %p1550_p2, %p1549_p1 }
  0x66   : > { %p1545_p0 = pneg %p1544_p12 }
  0x68   : > { %p1552_p8 = pnand %p1551_p4, %p1545_p0 }
  0x6a   : > { %1555 = shalt.err (!%p1552_p8)
}
  0x6b   : > { %1391 = dma.hbm_to_vmem [thread:$0]  (!%p1808_p11), %s2187_s6, 512, %s282_s20, [#allocation9], %s2173_s19, %s2173_s19, %s1700_s21  }
  0x6c   : > { %s1897_s26 = sadd.s32 1, %s1694_s30   ;;  %s35_s12 = sadd.s32 1, %s1690_s29 }
  0x6d   : > { %s32_s16 = ssub.s32 %s1694_s30, %s1897_s26  ;;  %p42_p8 = scmp.ne.s32.totalorder %s1690_s29, %s1686_s28 }
  0x6e   : > { %p33_p4 = scmp.eq.s32.totalorder %s32_s16, 0  ;;  %p43_p13 = scmp.eq.s32.totalorder %s1694_s30, 0 }
  0x6f   : > { %p1406_p6 = scmp.lt.s32.totalorder %s1694_s30, 2  ;;  %p2188_p3 = scmp.eq.s32.totalorder %s1778_s9, 1 }
  0x70   : > { %s1907_s22 = scalar_select %p33_p4, %s1690_s29, %s35_s12  }
  0x71   : > { %p44_p10 = por %p43_p13, %p42_p8  ;;  %p1911_p5 = por %p2188_p3, %p42_p8 }
  0x72   : > { %s1916_s24 = sand.u32 1, %s1690_s29   ;;  %s1262_s20 = sshll.u32 %s1694_s30, 9 }
  0x73   : > { %s1228_s25 = sshll.u32 %s1916_s24, 5  ;;  %s2190_s0 = sld [smem:[#allocation19_spill]] }
  0x74   : > { %s302_s15 = scalar_lea.vmem [#allocation2], %s1228_s25  ;;  %p1925_p11 = pnand %p1406_p6, %p44_p10 }
  0x75   : > { %s309_s18 = sshll.u32 %s302_s15, 4  ;;  %s299_s12 = scalar_lea.sflag [#allocation3], %s1916_s24  ;;  %s1929_s18 = int_to_ptr.vmem [resolvable:$true] %s309_s18 }
  0x76   : > { %p1558_p9 = pneg %p1925_p11 }
  0x79   : > { %s1923_s17 = scalar_lea.hbm %s2190_s0, %s1262_s20  ;;  %s1561_s10 = scalar_lea.hbm %s2190_s0, 1024 }
  0x7a   : > { %s1556_s19 = scalar_lea.hbm %s1923_s17, 512  ;;  %p1562_p1 = scmp.lt.u32.totalorder %s1923_s17, %s2190_s0 }
  0x7b   : > { %p1557_p7 = scmp.ne.s32.totalorder %s1923_s17, %s1556_s19  ;;  %p1563_p2 = scmp.lt.u32.totalorder %s1561_s10, %s1556_s19 }
  0x7c   : > { %p1565_p8 = scmp.lt.u32.totalorder %s1556_s19, %s1923_s17 }
  0x7d   : > { %p1559_p12 = pnand %p1558_p9, %p1557_p7  ;;  %p1564_p4 = por %p1563_p2, %p1562_p1 }
  0x7f   : > { %p1560_p0 = pneg %p1559_p12  ;;  %p1566_p13 = por %p1565_p8, %p1564_p4 }
  0x81   : > { %p1567_p6 = pnand %p1566_p13, %p1560_p0 }
  0x83   : > { %1570 = shalt.err (!%p1567_p6)
}
  0x84   : > { %s1571_s16 = scalar_lea.vmem %s1929_s18, 512  ;;  %s1701_s20 = smov [#allocation2]  }
  0x85   : > { %p1572_p10 = scmp.ne.s32.totalorder %s1929_s18, %s1571_s16  ;;  %s1576_s25 = sshll.u32 %s1701_s20, 4  ;;  %s1577_s25 = int_to_ptr.vmem [resolvable:$false] %s1576_s25 }
  0x86   : > { %s1578_s14 = scalar_lea.vmem %s1577_s25, 1024  ;;  %p1579_p12 = scmp.lt.s32.totalorder %s1929_s18, %s1577_s25 }
  0x87   : > { %p1574_p3 = pnand %p1572_p10, %p1558_p9  ;;  %p1580_p1 = scmp.lt.s32.totalorder %s1578_s14, %s1571_s16 }
  0x89   : > { %p1575_p7 = pneg %p1574_p3  ;;  %p1581_p2 = por %p1580_p1, %p1579_p12 }
  0x8b   : > { %p1582_p4 = pnand %p1581_p2, %p1575_p7 }
  0x8d   : > { %1585 = shalt.err (!%p1582_p4)
}
  0x8e   : > { %s2192_s19 = smov 128   ;;  %s1231_s10 = sshll.u32 %s1916_s24, 3 }
  0x8f   : > { %1395 = dma.hbm_to_vmem [thread:$0]  (!%p1925_p11), %s1923_s17, 512, %s1929_s18, %s299_s12, %s2192_s19, %s2192_s19, %s1700_s21  }
  0x90   : > { %s1263_s15 = sshll.u32 %s1694_s30, 7  ;;  %s323_s14 = scalar_lea.vmem [#allocation5], %s1231_s10 }
  0x91   : > { %s1968_s25 = scalar_lea.hbm %s2160_s1, %s1263_s15  ;;  %s330_s0 = sshll.u32 %s323_s14, 4  ;;  %s1970_s0 = int_to_ptr.vmem [resolvable:$true] %s330_s0 }
  0x92   : > { %s2193_s2 = sand.u32 1, %s1694_s30   ;;  %s1586_s6 = scalar_lea.hbm %s1968_s25, 128 }
  0x93   : > { %s1974_s4 = scalar_lea.sflag [#allocation6], %s2193_s2  ;;  %p1587_p0 = scmp.ne.s32.totalorder %s1968_s25, %s1586_s6 }
  0x94   : > { %s1591_s17 = scalar_lea.hbm %s2160_s1, 256  ;;  %p1592_p6 = scmp.lt.u32.totalorder %s1968_s25, %s2160_s1 }
  0x95   : > { %p1589_p8 = pnand %p1587_p0, %p1558_p9  ;;  %p1593_p10 = scmp.lt.u32.totalorder %s1591_s17, %s1586_s6 }
  0x96   : > { %p1595_p7 = scmp.lt.u32.totalorder %s1586_s6, %s1968_s25 }
  0x97   : > { %p1590_p13 = pneg %p1589_p8  ;;  %p1594_p3 = por %p1593_p10, %p1592_p6 }
  0x99   : > { %p1596_p12 = por %p1595_p7, %p1594_p3 }
  0x9b   : > { %p1597_p1 = pnand %p1596_p12, %p1590_p13 }
  0x9d   : > { %1600 = shalt.err (!%p1597_p1)
}
  0x9e   : > { %s1601_s2 = scalar_lea.vmem %s1970_s0, 128  ;;  %s1702_s19 = smov [#allocation5]  }
  0x9f   : > { %p1602_p2 = scmp.ne.s32.totalorder %s1970_s0, %s1601_s2  ;;  %s1606_s10 = sshll.u32 %s1702_s19, 4  ;;  %s1607_s10 = int_to_ptr.vmem [resolvable:$false] %s1606_s10 }
  0xa0   : > { %s1608_s15 = scalar_lea.vmem %s1607_s10, 256  ;;  %p1609_p8 = scmp.lt.s32.totalorder %s1970_s0, %s1607_s10 }
  0xa1   : > { %p1604_p4 = pnand %p1602_p2, %p1558_p9  ;;  %p1610_p6 = scmp.lt.s32.totalorder %s1608_s15, %s1601_s2 }
  0xa3   : > { %p1605_p0 = pneg %p1604_p4  ;;  %p1611_p10 = por %p1610_p6, %p1609_p8 }
  0xa5   : > { %p1612_p3 = pnand %p1611_p10, %p1605_p0 }
  0xa7   : > { %1615 = shalt.err (!%p1612_p3)
}
  0xa8   : > { %s1703_s6 = smov 32   ;;  %s1704_s16 = smov 2  }
  0xa9   : > { %1398 = dma.hbm_to_vmem [thread:$0]  (!%p1925_p11), %s1968_s25, 128, %s1970_s0, %s1974_s4, %s1703_s6, %s1703_s6, %s1704_s16  }
  0xaa   : > { %p2194_p9 = scmp.ne.s32.totalorder %s2182_s13, 0 }
  0xab   : > { %s2003_s20 = sand.u32 (!%p2194_p9), 1, %s1686_s28   ;;  %p2195_p13 = scmp.ne.s32.totalorder (!%p2194_p9), %s2179_s11, 0 }
  0xac   : > { %342 = sbr.rel (%p2194_p9) target bundleno = 1311 (0x51f), region = 52  ;;  %s1235_s14 = sshll.u32 (!%p2194_p9), %s2003_s20, 5 }
  0xad   : > { %s345_s21 = scalar_lea.sflag (!%p2194_p9), [#allocation3], %s2003_s20  ;;  %s2007_s24 = scalar_lea.vmem (!%p2194_p9), [#allocation2], %s1235_s14 }
  0xb3   : > { %1661 = dma.done.wait (%p2195_p13), %s345_s21, 512  }
  0xb4   : > { %1663 = vsyncadd (%p2195_p13), %s345_s21, 4294966784  ;;  %s353_s0 = sand.u32 1, %s1778_s9   ;;  %s1236_s4 = sshll.u32 %s2003_s20, 3 }
  0xb5   : > { %s354_s13 = scalar_lea.sflag [#allocation6], %s353_s0  ;;  %s2017_s27 = scalar_lea.vmem [#allocation5], %s1236_s4 }
  0xb6   : > { %1665 = dma.done.wait (%p2195_p13), %s354_s13, 128  }
  0xb7   : > { %1667 = vsyncadd (%p2195_p13), %s354_s13, 4294967168  ;;  %p2196_p11 = scmp.eq.s32.totalorder %s1778_s9, 0 }
  0xb9   : > { %1669 = dma.done.wait (%p2196_p11), [#allocation6], 512   ;;  %p2197_p7 = pmov %p2196_p11 }
  0xbb   : > { %1671 = vsyncadd (%p2197_p7), [#allocation6], 4294966784  ;;  %p2198_p12 = pmov %p2197_p7 }
  0xbc   : > { %p2199_p1 = pmov %p2197_p7 }
  0xbd   : > { %1673 = dma.done.wait (%p2198_p12), [#allocation9], 1024  }
  0xbe   : > { %1675 = vsyncadd (%p2199_p1), [#allocation9], 4294966272  ;;  %v424_v0 = vld [vmem:[#allocation8] sm:$0xff]  ;;  %v425_v1 = vld [vmem:[#allocation8 + $0x8] sm:$0xff]  ;;  %vm443_vm0 = vcmask 261120   ;;  %v1705_v24 = vmov 0.0  }
  0xbf   : > { %v426_v2 = vld [vmem:[#allocation8 + $0x10] sm:$0xff]  ;;  %v428_v3 = vpack.c.bf16 %v425_v1, %v424_v0  ;;  %v427_v4 = vld [vmem:[#allocation8 + $0x18] sm:$0xff]  ;;  %v418_v5 = vld [vmem:[#allocation7] sm:$0xff]  ;;  %vm1706_vm1 = vmmov 0   ;;  %vm887_vm2 = vcmask 1043456   ;;  %vm835_vm8 = vcmask 64512  }
  0xc0   : > { %v419_v6 = vld [vmem:[#allocation7 + $0x8] sm:$0xff]  ;;  %v429_v7 = vpack.c.bf16 %v427_v4, %v426_v2  ;;  %v412_v9 = vld [vmem:[%s2007_s24] sm:$0xff]  ;;  %v413_v10 = vld [vmem:[%s2007_s24 + $0x8] sm:$0xff]  ;;  %s1708_s19 = smov 32   ;;  %s1709_s10 = smov 64   ;;  %vm1082_vm12 = vcmask 523264  }
  0xc1   : > { %v422_v8 = vpack.c.bf16 %v419_v6, %v418_v5  ;;  %1300 = vmatprep.subr.bf16.mxu1 %v428_v3  ;;  %v416_v11 = vpack.c.bf16 %v413_v10, %v412_v9  ;;  %v414_v12 = vld [vmem:[%s2007_s24 + $0x10] sm:$0xff]  ;;  %v420_v13 = vld [vmem:[#allocation7 + $0x10] sm:$0xff]  ;;  %v421_v14 = vld [vmem:[#allocation7 + $0x18] sm:$0xff]  ;;  %v1707_v10 = vmov 0   ;;  %s1710_s15 = smov 96   ;;  %s1259_s6 = sshll.u32 %s1778_s9, 7 }
  0xc2   : > { %1301 = vmatpush3.bf16.msra.mxu1 %v428_v3  ;;  %v415_v15 = vld [vmem:[%s2007_s24 + $0x18] sm:$0xff]  ;;  %v423_v16 = vpack.c.bf16 %v421_v14, %v420_v13  ;;  %v430_v17 = vld [vmem:[#allocation10] sm:$0xff]  ;;  %v432_v21 = vld [vmem:[#allocation10 + $0x10] sm:$0xff]  ;;  %s406_s16 = scalar_lea.vmem [#allocation11], %s1236_s4  ;;  %vm1084_vm13 = vcmask 785408   ;;  %s2115_s0 = scalar_lea.hbm %s2167_s8, %s1259_s6 }
  0xc3   : > { %1292 = vmatprep.subr.bf16.mxu0 %v422_v8  ;;  %v431_v18 = vld [vmem:[#allocation10 + $0x8] sm:$0xff]  ;;  %1302 = vmatprep.subr.bf16.mxu1 %v429_v7  ;;  %v417_v20 = vpack.c.bf16 %v415_v15, %v414_v12  ;;  %v433_v22 = vld [vmem:[#allocation10 + $0x18] sm:$0xff]  ;;  %v1244_v25 = vld [vmem:[%s2164_s5] ss:$0 sm:$0xff]  ;;  %s1101_s14 = sshll.u32 %s406_s16, 4  ;;  %s1088_s9 = scalar_lea.sflag [#allocation4], %s2003_s20  ;;  %s2117_s14 = int_to_ptr.vmem [resolvable:$true] %s1101_s14 }
  0xc4   : > { %1293 = vmatpush3.bf16.msra.mxu0 %v422_v8  ;;  %1304 = vmatprep.mubr.msk.bf16.mxu1 %vm443_vm0, %v416_v11  ;;  %v434_v19 = vpack.c.bf16 %v431_v18, %v430_v17  ;;  %v435_v23 = vpack.c.bf16 %v433_v22, %v432_v21  ;;  %v1241_v33 = vld [vmem:[%s2162_s3] ss:$0 sm:$0xff]  ;;  %v812_v9 = vld [vmem:[%s2017_s27 + $0x2] sm:$0x3]  ;;  %v813_v13 = vld [vmem:[%s2017_s27 + $0x4] sm:$0x3] }
  0xc5   : > { %1294 = vmatprep.subr.bf16.mxu0 %v423_v16  ;;  %1296 = vmatprep.mubr.msk.bf16.mxu0 %vm443_vm0, %v416_v11  ;;  %v1247_v42 = vld [vmem:[%s2166_s7] ss:$0 sm:$0xff]  ;;  %vm816_vm4 = vnez %v812_v9  ;;  %v814_v15 = vld [vmem:[%s2017_s27 + $0x6] sm:$0x3]  ;;  %vm817_vm5 = vnez %v813_v13  ;;  %s1616_s4 = scalar_lea.vmem %s2117_s14, 128  ;;  %s1711_s13 = smov [#allocation11]  }
  0xc6   : > { %1303 = vmatpush3.bf16.msra.mxu1 %v429_v7  ;;  %v811_v8 = vld [vmem:[%s2017_s27] sm:$0x3]  ;;  %v820_v12 = vsel %vm816_vm4, 16843009, %v1707_v10  ;;  %vm818_vm6 = vnez %v814_v15  ;;  %p1617_p2 = scmp.ne.s32.totalorder %s2117_s14, %s1616_s4  ;;  %s1620_s27 = sshll.u32 %s1711_s13, 4  ;;  %s1621_s27 = int_to_ptr.vmem [resolvable:$false] %s1620_s27 }
  0xc7   : > { %1316 = vmatprep.subr.bf16.mxu1 %v1705_v24  ;;  %vm815_vm3 = vnez %v811_v8  ;;  %s1622_s11 = scalar_lea.vmem %s1621_s27, 256  ;;  %p1623_p8 = scmp.lt.s32.totalorder %s2117_s14, %s1621_s27 }
  0xc8   : > { %1295 = vmatpush3.bf16.msra.mxu0 %v423_v16  ;;  %v824_v16 = vunpack.c.0.s8 %v820_v12  ;;  %p1618_p4 = pnand %p1617_p2, %p1911_p5  ;;  %p1624_p6 = scmp.lt.s32.totalorder %s1622_s11, %s1616_s4 }
  0xc9   : > { %1308 = vmatprep.subr.bf16.mxu0 %v434_v19  ;;  %1305 = vmatmul.mubr.msk.bf16.vlgmr.msra.gmra.mrb[0].mxu1 %vm443_vm0, %v417_v20 }
  0xca   : > { %1318 = vmatprep.mubr.msk.bf16.mxu1 %vm1706_vm1, %v1705_v24  ;;  %vm828_vm9 = vcmp.ne.s32.totalorder %v824_v16, 0  ;;  %p1619_p0 = pneg %p1618_p4  ;;  %p1625_p10 = por %p1624_p6, %p1623_p8 }
  0xcb   : > { %1297 = vmatmul.mubr.msk.bf16.vlgmr.msra.gmra.mrb[0].mxu0 %vm443_vm0, %v417_v20 }
  0xcc   : > { %1309 = vmatpush3.bf16.msra.mxu0 %v434_v19  ;;  %1312 = vmatprep.mubr.msk.bf16.mxu0 %vm443_vm0, %v416_v11  ;;  %v819_v11 = vsel %vm815_vm3, 16843009, %v1707_v10  ;;  %p1626_p3 = pnand %p1625_p10, %p1619_p0 }
  0xcd   : > { %1310 = vmatprep.subr.bf16.mxu0 %v435_v23  ;;  %v823_v14 = vunpack.c.0.s8 %v819_v11 }
  0xcf   : > { %vm827_vm7 = vcmp.ne.s32.totalorder %v823_v14, 0 }
  0xd0   : > { %1311 = vmatpush3.bf16.msra.mxu0 %v435_v23  ;;  %v822_v23 = vsel %vm818_vm6, 16843009, %v1707_v10 }
  0xd1   : > { %1322 = vmatprep.subr.bf16.mxu0 %v1705_v24 }
  0xd3   : > { %1313 = vmatmul.mubr.msk.bf16.vlgmr.msra.gmra.mrb[4].mxu0 %vm443_vm0, %v417_v20  ;;  %v821_v20 = vsel %vm817_vm5, 16843009, %v1707_v10 }
  0xd4   : > { %1324 = vmatprep.mubr.msk.bf16.mxu0 %vm1706_vm1, %v1705_v24 }
 0x19c   : > { %v1306_v26 = vpop.f32.mrb[0].mxu1 }
 0x19d   : > { %v540_v27 = vpop.f32.mrb[1].mxu1  ;;  %v549_v38 = vadd.f32 %v1306_v26, %v1244_v25 }
 0x19e   : > { %v1298_v28 = vpop.f32.mrb[0].mxu0  ;;  %v541_v29 = vadd.f32 %v1244_v25, %v540_v27  ;;  %v1307_v30 = vpop.f32.mrb[2].mxu1 }
 0x19f   : > { %v484_v31 = vpop.f32.mrb[1].mxu0  ;;  %v543_v32 = vpop.f32.mrb[3].mxu1  ;;  %v552_v43 = vadd.f32 %v1307_v30, %v1244_v25  ;;  %v617_v45 = vpack.c.bf16 %v549_v38, %v549_v38  ;;  %v493_v63 = vadd.f32 %v1298_v28, %v1241_v33 }
 0x1a0   : > { %v1299_v34 = vpop.f32.mrb[2].mxu0  ;;  %v615_v35 = vpack.c.bf16 %v541_v29, %v541_v29  ;;  %v544_v36 = vadd.f32 %v1244_v25, %v543_v32  ;;  %v485_v41 = vadd.f32 %v1241_v33, %v484_v31  ;;  %v825_v31 = vunpack.c.0.s8 %v821_v20 }
 0x1a1   : > { %v487_v37 = vpop.f32.mrb[3].mxu0  ;;  %v618_v52 = vpack.c.bf16 %v552_v43, %v552_v43  ;;  %v719_v57 = vsel %vm443_vm0, %v617_v45, 0  ;;  %v496_v2 = vadd.f32 %v1299_v34, %v1241_v33  ;;  %v613_v4 = vpack.c.bf16 %v493_v63, %v493_v63 }
 0x1a2   : > { %v627_v39 = vsel %vm443_vm0, %v615_v35, 0  ;;  %v616_v40 = vpack.c.bf16 %v544_v36, %v544_v36  ;;  %v611_v47 = vpack.c.bf16 %v485_v41, %v485_v41  ;;  %v488_v48 = vadd.f32 %v1241_v33, %v487_v37 }
 0x1a3   : > { %1317 = vmatpush3.bf16.xpose.msra.mxu1 %v627_v39  ;;  %v765_v62 = vsel %vm443_vm0, %v618_v52, 0  ;;  %v614_v6 = vpack.c.bf16 %v496_v2, %v496_v2  ;;  %v826_v34 = vunpack.c.0.s8 %v822_v23  ;;  %vm829_vm10 = vcmp.ne.s32.totalorder %v825_v31, 0 }
 0x1a4   : > { %v673_v44 = vsel %vm443_vm0, %v616_v40, 0  ;;  %1328 = vmatprep.subr.bf16.mxu1 %v1705_v24  ;;  %v612_v58 = vpack.c.bf16 %v488_v48, %v488_v48 }
 0x1a5   : > { %1323 = vmatpush3.bf16.xpose.msra.mxu0 %v673_v44  ;;  %vm830_vm11 = vcmp.ne.s32.totalorder %v826_v34, 0 }
 0x1a6   : > { %v1314_v46 = vpop.f32.mrb[4].mxu0  ;;  %1334 = vmatprep.subr.bf16.mxu0 %v1705_v24 }
 0x1a7   : > { %v605_v49 = vadd.f32 %v1314_v46, %v1247_v42  ;;  %v596_v50 = vpop.f32.mrb[5].mxu0 }
 0x1a8   : > { %v1315_v51 = vpop.f32.mrb[6].mxu0  ;;  %v597_v54 = vadd.f32 %v1247_v42, %v596_v50 }
 0x1a9   : > { %v621_v53 = vpack.c.bf16 %v605_v49, %v605_v49  ;;  %v608_v55 = vadd.f32 %v1315_v51, %v1247_v42  ;;  %v599_v56 = vpop.f32.mrb[7].mxu0 }
 0x1aa   : > { %1319 = vmatmul.mubr.msk.bf16.vlgmr.msra.gmra.mrb[4].mxu1 %vm443_vm0, %v611_v47  ;;  %v600_v61 = vadd.f32 %v1247_v42, %v599_v56  ;;  %v619_v0 = vpack.c.bf16 %v597_v54, %v597_v54 }
 0x1ab   : > { %v2063_v59 = vsel %vm887_vm2, %v621_v53, 0  ;;  %v622_v60 = vpack.c.bf16 %v608_v55, %v608_v55  ;;  %1329 = vmatpush3.bf16.xpose.msra.mxu1 %v719_v57  ;;  %1330 = vmatprep.mubr.msk.bf16.mxu1 %vm1706_vm1, %v1705_v24 }
 0x1ac   : > { %1325 = vmatmul.mubr.msk.bf16.vlgmr.msra.gmra.mrb[8].mxu0 %vm443_vm0, %v612_v58  ;;  %1340 = vmatprep.subr.bf16.mxu1 %v1705_v24  ;;  %v620_v3 = vpack.c.bf16 %v600_v61, %v600_v61  ;;  %v889_v5 = vsel %vm887_vm2, %v619_v0, 0 }
 0x1ad   : > { %v2070_v1 = vsel %vm887_vm2, %v622_v60, 0  ;;  %1335 = vmatpush3.bf16.xpose.msra.mxu0 %v765_v62  ;;  %1336 = vmatprep.mubr.msk.bf16.mxu0 %vm1706_vm1, %v1705_v24 }
 0x1ae   : > { %1346 = vmatprep.subr.bf16.mxu0 %v1705_v24  ;;  %v935_v7 = vsel %vm887_vm2, %v620_v3, 0 }
 0x1b2   : > { %1331 = vmatmul.mubr.msk.bf16.vlgmr.msra.gmra.mrb[8].mxu1 %vm443_vm0, %v613_v4 }
 0x1b3   : > { %1341 = vmatpush3.bf16.msra.mxu1 %v889_v5  ;;  %1342 = vmatprep.mubr.msk.bf16.mxu1 %vm1706_vm1, %v1705_v24 }
 0x1b4   : > { %1337 = vmatmul.mubr.msk.bf16.vlgmr.msra.gmra.mrb[12].mxu0 %vm443_vm0, %v614_v6  ;;  %1352 = vmatprep.subr.bf16.mxu1 %v1705_v24 }
 0x1b5   : > { %1347 = vmatpush3.bf16.msra.mxu0 %v935_v7  ;;  %1348 = vmatprep.mubr.msk.bf16.mxu0 %vm1706_vm1, %v1705_v24 }
 0x1b6   : > { %1358 = vmatprep.subr.bf16.mxu0 %v1705_v24 }
 0x27d   : > { %v663_v17 = vpop.f32.mrb[4].mxu1 }
 0x27e   : > { %v807_v18 = vmul.f32 0.17677669, %v663_v17  ;;  %v1320_v19 = vpop.f32.mrb[5].mxu1 }
 0x27f   : > { %v666_v21 = vpop.f32.mrb[6].mxu1  ;;  %v709_v22 = vpop.f32.mrb[8].mxu0 }
 0x280   : > { %v808_v25 = vmul.f32 0.17677669, %v709_v22  ;;  %v1321_v26 = vpop.f32.mrb[7].mxu1  ;;  %v1326_v27 = vpop.f32.mrb[9].mxu0  ;;  %v831_v28 = vsel %vm827_vm7, -1e+30, %v807_v18 }
 0x281   : > { %v712_v29 = vpop.f32.mrb[10].mxu0  ;;  %v836_v30 = vsel %vm835_vm8, %v831_v28, -inf }
 0x282   : > { %v1327_v32 = vpop.f32.mrb[11].mxu0  ;;  %837 = vmax.xlane.f32.xlu0 %v836_v30  ;;  %v832_v33 = vsel %vm828_vm9, -1e+30, %v808_v25 }
 0x283   : > { %v839_v36 = vsel %vm835_vm8, %v832_v33, -inf }
 0x285   : > { %v755_v35 = vpop.f32.mrb[8].mxu1 }
 0x286   : > { %v809_v37 = vmul.f32 0.17677669, %v755_v35  ;;  %840 = vmax.xlane.f32.xlu0 %v839_v36  ;;  %v1332_v38 = vpop.f32.mrb[9].mxu1 }
 0x287   : > { %v758_v39 = vpop.f32.mrb[10].mxu1  ;;  %v801_v40 = vpop.f32.mrb[12].mxu0 }
 0x288   : > { %v810_v41 = vmul.f32 0.17677669, %v801_v40  ;;  %v1333_v42 = vpop.f32.mrb[11].mxu1  ;;  %v1338_v43 = vpop.f32.mrb[13].mxu0  ;;  %v833_v44 = vsel %vm829_vm10, -1e+30, %v809_v37 }
 0x289   : > { %v804_v45 = vpop.f32.mrb[14].mxu0  ;;  %v842_v46 = vsel %vm835_vm8, %v833_v44, -inf }
 0x28a   : > { %v1339_v47 = vpop.f32.mrb[15].mxu0  ;;  %843 = vmax.xlane.f32.xlu1 %v842_v46  ;;  %v834_v48 = vsel %vm830_vm11, -1e+30, %v810_v41 }
 0x28b   : > { %v845_v49 = vsel %vm835_vm8, %v834_v48, -inf }
 0x28e   : > { %846 = vmax.xlane.f32.xlu1 %v845_v49 }
 0x30f   : > { %v838_v50 = vpop.xlane.xlu0 %837 }
 0x310   : > { %v848_v51 = vsub.f32 %v831_v28, %v838_v50 }
 0x312   : > { %v852_v52 = vmul.f32 1.442695, %v848_v51 }
 0x313   : > { %v841_v53 = vpop.xlane.xlu0 %840 }
 0x314   : > { %1456 = vpow2.f32 %v852_v52  ;;  %v849_v54 = vsub.f32 %v832_v33, %v841_v53 }
 0x316   : > { %v854_v55 = vmul.f32 1.442695, %v849_v54 }
 0x317   : > { %v844_v56 = vpop.xlane.xlu1 %843 }
 0x318   : > { %1458 = vpow2.f32 %v854_v55  ;;  %v850_v57 = vsub.f32 %v833_v44, %v844_v56 }
 0x31a   : > { %v856_v58 = vmul.f32 1.442695, %v850_v57 }
 0x31b   : > { %v847_v60 = vpop.xlane.xlu1 %846 }
 0x31c   : > { %1460 = vpow2.f32 %v856_v58  ;;  %v851_v61 = vsub.f32 %v834_v48, %v847_v60 }
 0x31e   : > { %v1457_v62 = vpop.eup %1456  ;;  %v858_v63 = vmul.f32 1.442695, %v851_v61 }
 0x31f   : > { %v860_v0 = vsel %vm835_vm8, %v1457_v62, 0.0 }
 0x320   : > { %1462 = vpow2.f32 %v858_v63  ;;  %861 = vadd.xlane.f32.xlu0 %v860_v0 }
 0x322   : > { %v1459_v2 = vpop.eup %1458 }
 0x323   : > { %v863_v3 = vsel %vm835_vm8, %v1459_v2, 0.0 }
 0x324   : > { %864 = vadd.xlane.f32.xlu1 %v863_v3 }
 0x326   : > { %v1461_v4 = vpop.eup %1460 }
 0x327   : > { %v866_v5 = vsel %vm835_vm8, %v1461_v4, 0.0 }
 0x328   : > { %867 = vadd.xlane.f32.xlu0 %v866_v5 }
 0x32a   : > { %v1463_v6 = vpop.eup %1462 }
 0x32b   : > { %v869_v7 = vsel %vm835_vm8, %v1463_v6, 0.0 }
 0x32c   : > { %870 = vadd.xlane.f32.xlu1 %v869_v7 }
 0x3ad   : > { %v862_v8 = vpop.xlane.xlu0 %861 }
 0x3ae   : > { %1464 = vrcp.f32 %v862_v8 }
 0x3b1   : > { %v865_v9 = vpop.xlane.xlu1 %864 }
 0x3b2   : > { %1466 = vrcp.f32 %v865_v9 }
 0x3b5   : > { %v868_v10 = vpop.xlane.xlu0 %867 }
 0x3b6   : > { %1468 = vrcp.f32 %v868_v10 }
 0x3b8   : > { %v1465_v11 = vpop.eup %1464 }
 0x3b9   : > { %v876_v12 = vmul.f32 %v1465_v11, %v1457_v62  ;;  %v871_v13 = vpop.xlane.xlu1 %870 }
 0x3ba   : > { %1470 = vrcp.f32 %v871_v13 }
 0x3bb   : > { %v880_v14 = vpack.c.bf16 %v876_v12, %v876_v12 }
 0x3bc   : > { %v1467_v15 = vpop.eup %1466 }
 0x3bd   : > { %v877_v16 = vmul.f32 %v1467_v15, %v1459_v2  ;;  %1343 = vmatmul.mubr.msk.bf16.vlgmr.msra.gmra.mrb[12].mxu1 %vm835_vm8, %v880_v14 }
 0x3be   : > { %1353 = vmatpush3.bf16.msra.mxu1 %v2063_v59  ;;  %1354 = vmatprep.mubr.msk.bf16.mxu1 %vm1706_vm1, %v1705_v24 }
 0x3bf   : > { %v881_v17 = vpack.c.bf16 %v877_v16, %v877_v16 }
 0x3c0   : > { %v1469_v18 = vpop.eup %1468 }
 0x3c1   : > { %v878_v19 = vmul.f32 %v1469_v18, %v1461_v4  ;;  %1349 = vmatmul.mubr.msk.bf16.vlgmr.msra.gmra.mrb[16].mxu0 %vm835_vm8, %v881_v17 }
 0x3c2   : > { %1359 = vmatpush3.bf16.msra.mxu0 %v2070_v1  ;;  %1360 = vmatprep.mubr.msk.bf16.mxu0 %vm1706_vm1, %v1705_v24 }
 0x3c3   : > { %v882_v20 = vpack.c.bf16 %v878_v19, %v878_v19 }
 0x3c4   : > { %v1471_v21 = vpop.eup %1470 }
 0x3c5   : > { %v879_v22 = vmul.f32 %v1471_v21, %v1463_v6  ;;  %1355 = vmatmul.mubr.msk.bf16.vlgmr.msra.gmra.mrb[16].mxu1 %vm835_vm8, %v882_v20 }
 0x3c7   : > { %v883_v23 = vpack.c.bf16 %v879_v22, %v879_v22 }
 0x3c9   : > { %1361 = vmatmul.mubr.msk.bf16.vlgmr.msra.gmra.mrb[20].mxu0 %vm835_vm8, %v883_v23 }
 0x490   : > { %v925_v59 = vpop.f32.mrb[12].mxu1 }
 0x491   : > { %v1344_v25 = vpop.f32.mrb[13].mxu1 }
 0x492   : > { %v928_v26 = vpop.f32.mrb[14].mxu1 }
 0x493   : > { %v1345_v27 = vpop.f32.mrb[15].mxu1 }
 0x494   : > { %v971_v28 = vpop.f32.mrb[16].mxu0 }
 0x495   : > { %1070 = vrot.lane.b32.xlu0 %v971_v28, %s1708_s19  ;;  %v1350_v29 = vpop.f32.mrb[17].mxu0 }
 0x496   : > { %v974_v1 = vpop.f32.mrb[18].mxu0 }
 0x497   : > { %v1351_v30 = vpop.f32.mrb[19].mxu0 }
 0x498   : > { %v1017_v24 = vpop.f32.mrb[16].mxu1 }
 0x499   : > { %1074 = vrot.lane.b32.xlu1 %v1017_v24, %s1709_s10  ;;  %v1356_v31 = vpop.f32.mrb[17].mxu1 }
 0x49a   : > { %v1020_v32 = vpop.f32.mrb[18].mxu1 }
 0x49b   : > { %v1357_v33 = vpop.f32.mrb[19].mxu1 }
 0x49c   : > { %v1063_v34 = vpop.f32.mrb[20].mxu0 }
 0x49d   : > { %v1362_v35 = vpop.f32.mrb[21].mxu0  ;;  %1078 = vrot.lane.b32.xlu1 %v1063_v34, %s1710_s15 }
 0x49e   : > { %v1066_v36 = vpop.f32.mrb[22].mxu0 }
 0x49f   : > { %v1363_v37 = vpop.f32.mrb[23].mxu0 }
 0x507   : > { %v1071_v38 = vpop.permute.xlu0 %1070 }
 0x508   : > { %v1081_v40 = vsel %vm443_vm0, %v925_v59, %v1071_v38 }
 0x50b   : > { %v1075_v39 = vpop.permute.xlu1 %1074 }
 0x50c   : > { %v1083_v41 = vsel %vm1082_vm12, %v1081_v40, %v1075_v39 }
 0x50f   : > { %v1079_v42 = vpop.permute.xlu1 %1078 }
 0x510   : > { %v1085_v43 = vsel %vm1084_vm13, %v1083_v41, %v1079_v42 }
 0x511   : > { %1086 = vst [vmem:[%s406_s16] sm:$0xff] %v1085_v43 }
 0x512   : > { %1629 = shalt.err (!%p1626_p3)
}
 0x513   : > { %s1630_s20 = scalar_lea.hbm %s2115_s0, 128  ;;  %s1634_s18 = scalar_lea.hbm %s2167_s8, 256 }
 0x514   : > { %p1631_p9 = scmp.ne.s32.totalorder %s2115_s0, %s1630_s20  ;;  %p1635_p7 = scmp.lt.u32.totalorder %s2115_s0, %s2167_s8 }
 0x515   : > { %p1636_p12 = scmp.lt.u32.totalorder %s1634_s18, %s1630_s20  ;;  %p1638_p2 = scmp.lt.u32.totalorder %s1630_s20, %s2115_s0 }
 0x516   : > { %p1632_p13 = pnand %p1631_p9, %p1911_p5 }
 0x517   : > { %p1637_p1 = por %p1636_p12, %p1635_p7 }
 0x518   : > { %p1633_p11 = pneg %p1632_p13 }
 0x519   : > { %p1639_p4 = por %p1638_p2, %p1637_p1 }
 0x51b   : > { %p1640_p0 = pnand %p1639_p4, %p1633_p11 }
 0x51d   : > { %1643 = shalt.err (!%p1640_p0)
}
 0x51e   : > { %1380 = dma.vmem_to_hbm [thread:$0]  (%p1911_p5), %s2117_s14, 128, %s2115_s0, %s1088_s9  }
 0x51f PF: > { %s2200_s19 = sld [smem:[#allocation17_spill]]  ;;  %s2201_s10 = sld [smem:[#allocation18_spill]] }
 0x520   : > { %p2203_p6 = scmp.ge.s32.totalorder %s1694_s30, 2 }
 0x525   : > { %s1113_s15 = sand.u32 1, %s2200_s19   ;;  %p2202_p8 = scmp.ne.s32.totalorder %s2201_s10, 0 }
 0x526   : > { %s1114_s6 = scalar_lea.sflag [#allocation4], %s1113_s15 }
 0x527   : > { %p1400_p10 = pnand %p2203_p6, %p2202_p8 }
 0x529   : > { %1677 = dma.done.wait (!%p1400_p10), %s1114_s6, 128  }
 0x52a   : > { %1679 = vsyncadd (!%p1400_p10), %s1114_s6, 4294967168  ;;  %p25_p3 = scmp.ge.s32.totalorder %s1897_s26, 4   ;;  %s2204_s27 = smov %s1686_s28 }
 0x52b   : > { %s2205_s28 = smov %s1690_s29  ;;  %s2206_s29 = smov %s1907_s22 }
 0x52c   : > { %s2207_s30 = smov %s1897_s26  ;;  %27 = sbr.rel (!%p25_p3) target bundleno = 13 (0xd), region = 122 }
 0x533   :  { %1119 = vsyncpa [#allocation3], 1 }
 0x534   :  { %1121 = vsyncpa [#allocation3 + $0x1], 1 }
 0x535   :  { %1122 = vsyncpa [#allocation6], 1 }
 0x536   :  { %1124 = vsyncpa [#allocation6 + $0x1], 1 }
 0x537   :  { %1125 = vsyncpa [#allocation9], 1 }
 0x538   :  { %1126 = vsyncpa [#allocation4], 1 }
 0x539   :  { %1128 = vsyncpa [#allocation4 + $0x1], 1 }

</bundles_post_ra>
